<compile_context>
chip_gen: v5e
topology: v5e:2x2
jax: 0.10.0
libtpu: 0.0.40
codegen_flags: <defaults>
</compile_context>

<pallas_src>
import jax
import jax.numpy as jnp
from jax.experimental import pallas as pl
from jax.experimental.pallas import tpu as pltpu


def _round_up(n, m):
    return ((n + m - 1) // m) * m


def _sublane(dtype):
    # minimal second-to-last-dim packing: f32 -> 8, bf16 -> 16, int8/fp8 -> 32
    return max(8, 32 // jnp.dtype(dtype).itemsize)


def _tpu_generation():
    try:
        kind = jax.devices()[0].device_kind.lower()
    except Exception:
        return 6
    for g in (7, 6, 5, 4, 3):
        if f"v{g}" in kind:
            return g
    return 6


def _ffn_body(x_ref, w1_ref, w2_ref, b_ref, o_ref, acc_ref):
    """One (row-tile, hidden-tile) step of fused fc_1 -> fc_2.

    Grid axis 0: row tiles ("parallel").
    Grid axis 1: hidden tiles -- N-tile of fc_1 / K-reduction of fc_2
    ("arbitrary"); partial sums live in the resident f32 accumulator
    (either a VMEM scratch or the f32 output block itself).
    """
    h = pl.program_id(1)

    @pl.when(h == 0)
    def _():
        acc_ref[...] = jnp.zeros_like(acc_ref)

    # fc_1 for this hidden slice (bias folded into the finalize-time add).
    hid = jnp.dot(x_ref[...], w1_ref[...], preferred_element_type=jnp.float32)
    # fc_2 partial sum over this hidden slice.
    acc_ref[...] += jnp.dot(hid.astype(w2_ref.dtype), w2_ref[...],
                            preferred_element_type=jnp.float32)

    @pl.when(h == pl.num_programs(1) - 1)
    def _():
        o_ref[...] = (acc_ref[...] + b_ref[...]).astype(o_ref.dtype)


def _ffn_kernel_scratch(x_ref, w1_ref, w2_ref, b_ref, o_ref, acc_ref):
    _ffn_body(x_ref, w1_ref, w2_ref, b_ref, o_ref, acc_ref)


def _ffn_kernel_inplace(x_ref, w1_ref, w2_ref, b_ref, o_ref):
    # f32 output: accumulate straight into the resident output block.
    _ffn_body(x_ref, w1_ref, w2_ref, b_ref, o_ref, o_ref)


def feed_forward(x, w1, b1, w2, b2, *, compute_dtype=jnp.bfloat16,
                 tm=None, th=None, vmem_limit_bytes=None):
    """x: [..., dim_model] -> [..., dim_model]   (fc_2(fc_1(x)), no activation).

    Weights are pre-transposed vs. PyTorch: w1 [dim_model, dim_hidden],
    w2 [dim_hidden, dim_model]; b1 [.., dim_hidden], b2 [.., dim_model].
    """
    orig_shape = x.shape
    dim_model, dim_hidden = w1.shape
    out_dtype = x.dtype

    # Fold both biases into one finalize-time add (exact: no activation).
    # (For fixed weights this [1, dim_model] vector can be precomputed once.)
    fused_bias = (jnp.dot(b1.reshape(-1).astype(jnp.float32),
                          w2.astype(jnp.float32))
                  + b2.reshape(-1).astype(jnp.float32)).reshape(1, dim_model)

    # bf16 compute path (f32 accumulation inside the kernel).
    x2d = x.reshape(-1, dim_model).astype(compute_dtype)
    w1c = w1.astype(compute_dtype)
    w2c = w2.astype(compute_dtype)
    M = x2d.shape[0]

    x_bytes = jnp.dtype(compute_dtype).itemsize
    w_bytes = x_bytes
    out_bytes = jnp.dtype(out_dtype).itemsize
    use_scratch = jnp.dtype(out_dtype) != jnp.dtype(jnp.float32)

    # ----- generation-aware sizing ------------------------------------------
    gen = _tpu_generation()
    if gen >= 7:        # 64 MiB VMEM/TC, 2x256x256 MXU, balance ~310 FLOP/B
        gran, cap_bytes, tm_def = 256, 52 << 20, 512
    elif gen == 6:      # 128 MiB VMEM, 2x256x256 MXU, balance ~680 FLOP/B
        gran, cap_bytes, tm_def = 256, 100 << 20, 1024
    elif gen == 5:      # 128 MiB VMEM, 4x128x128 MXU, balance ~240 FLOP/B
        gran, cap_bytes, tm_def = 128, 100 << 20, 512
    else:               # unknown/older: conservative
        gran, cap_bytes, tm_def = 128, 32 << 20, 256

    sub = max(_sublane(compute_dtype), _sublane(out_dtype))

    # Lane-dense feature padding at MXU-matching granularity.
    dm_p = _round_up(dim_model, gran)
    if th is None:
        th = 512
    th = min(_round_up(th, gran), _round_up(dim_hidden, gran))
    if tm is None:
        tm = tm_def
    tm = max(sub, min(_round_up(tm, sub), _round_up(M, sub)))

    def footprint(tm_, th_):
        fp = 2 * tm_ * dm_p * x_bytes            # x tile (double-buffered)
        fp += 2 * dm_p * th_ * w_bytes           # W1 tile
        fp += 2 * th_ * dm_p * w_bytes           # W2 tile
        fp += 2 * tm_ * dm_p * out_bytes         # out tile
        fp += tm_ * dm_p * 4 if use_scratch else 0   # f32 accumulator scratch
        fp += tm_ * th_ * (4 + w_bytes)          # hid (f32) + bf16 cast copy
        fp += 2 * dm_p * 4                       # fused bias
        return fp

    # Derive tiles from the VMEM budget: shrink th first, then tm.
    budget = int(cap_bytes * 0.75)
    while footprint(tm, th) > budget and th > gran:
        th = max(gran, (th // 2) // gran * gran)
    while footprint(tm, th) > budget and tm > sub:
        tm = max(sub, _round_up(tm // 2, sub))

    dh_p = _round_up(dim_hidden, th)
    M_p = _round_up(M, tm)
    grid = (M_p // tm, dh_p // th)

    # ----- zero-padding (guarded: no-op when already aligned) ----------------
    def _pad2(a, rows, cols):
        pr, pc = rows - a.shape[0], cols - a.shape[1]
        if pr or pc:
            a = jnp.pad(a, ((0, pr), (0, pc)))
        return a

    x_p = _pad2(x2d, M_p, dm_p)
    w1_p = _pad2(w1c, dm_p, dh_p)
    w2_p = _pad2(w2c, dh_p, dm_p)
    b_p = _pad2(fused_bias, 1, dm_p)

    if vmem_limit_bytes is None:
        vmem_limit_bytes = int(min(cap_bytes,
                                   max(footprint(tm, th) * 1.3 + (2 << 20),
                                       16 << 20)))

    # Advisory cost: W1/W2 are re-streamed once per row tile.
    n_row_tiles = M_p // tm
    flops = 4 * M_p * dm_p * dh_p
    bytes_accessed = (M_p * dm_p * x_bytes
                      + n_row_tiles * 2 * dm_p * dh_p * w_bytes
                      + dm_p * 4
                      + M_p * dm_p * out_bytes)
    cost = pl.CostEstimate(flops=int(flops), transcendentals=0,
                           bytes_accessed=int(bytes_accessed))

    kernel = _ffn_kernel_scratch if use_scratch else _ffn_kernel_inplace
    scratch = [pltpu.VMEM((tm, dm_p), jnp.float32)] if use_scratch else []

    out = pl.pallas_call(
        kernel,
        out_shape=jax.ShapeDtypeStruct((M_p, dm_p), out_dtype),
        grid_spec=pltpu.PrefetchScalarGridSpec(
            num_scalar_prefetch=0,
            grid=grid,
            in_specs=[
                pl.BlockSpec((tm, dm_p), lambda i, h: (i, 0)),   # x row tile
                pl.BlockSpec((dm_p, th), lambda i, h: (0, h)),   # W1 hidden slice
                pl.BlockSpec((th, dm_p), lambda i, h: (h, 0)),   # W2 hidden slice
                pl.BlockSpec((1, dm_p), lambda i, h: (0, 0)),    # fused bias
            ],
            out_specs=pl.BlockSpec((tm, dm_p), lambda i, h: (i, 0)),
            scratch_shapes=scratch,
        ),
        compiler_params=pltpu.CompilerParams(
            dimension_semantics=("parallel", "arbitrary"),
            vmem_limit_bytes=int(vmem_limit_bytes),
        ),
        cost_estimate=cost,
    )(x_p, w1_p, w2_p, b_p)

    return out[:M, :dim_model].reshape(orig_shape)


def init_params(key, dim_model, dim_hidden, dtype=jnp.float32):
    """Deterministic init matching nn.Linear shapes (weights pre-transposed)."""
    k1, k2, k3, k4 = jax.random.split(key, 4)
    bound1 = 1.0 / (dim_model ** 0.5)
    bound2 = 1.0 / (dim_hidden ** 0.5)
    w1 = jax.random.uniform(k1, (dim_model, dim_hidden), dtype, -bound1, bound1)
    b1 = jax.random.uniform(k2, (1, dim_hidden), dtype, -bound1, bound1)
    w2 = jax.random.uniform(k3, (dim_hidden, dim_model), dtype, -bound2, bound2)
    b2 = jax.random.uniform(k4, (1, dim_model), dtype, -bound2, bound2)
    return w1, b1, w2, b2


if __name__ == "__main__":
    dim_model, dim_hidden = 32, 64
    batch, seq = 2, 8

    key = jax.random.PRNGKey(0)
    kx, kp = jax.random.split(key)
    x = jax.random.normal(kx, (batch, seq, dim_model), jnp.float32)
    w1, b1, w2, b2 = init_params(kp, dim_model, dim_hidden)

    out = feed_forward(x, w1, b1, w2, b2)
    out = jax.block_until_ready(out)

    # pure-JAX f32 reference; default kernel path runs bf16 operands with f32
    # accumulation, so use tolerances matching the bf16 intermediate.
    ref = (x.reshape(-1, dim_model) @ w1 + b1) @ w2 + b2
    ref = ref.reshape(batch, seq, dim_model)
    assert out.shape == (batch, seq, dim_model)
    assert out.dtype == x.dtype
    max_err = float(jnp.max(jnp.abs(out - ref)))
    assert jnp.allclose(out, ref, atol=2e-2, rtol=2e-2), f"max_err={max_err}"

    print("KERNEL_OK")
</pallas_src>

<mosaic_0001>
module attributes {stable_mosaic.version = 11 : i64} {
  func.func @_ffn_kernel_inplace(%arg0: i32, %arg1: i32, %arg2: memref<16x256xbf16, #tpu.memory_space<vmem>>, %arg3: memref<256x256xbf16, #tpu.memory_space<vmem>>, %arg4: memref<256x256xbf16, #tpu.memory_space<vmem>>, %arg5: memref<1x256xf32, #tpu.memory_space<vmem>>, %arg6: memref<16x256xf32, #tpu.memory_space<vmem>>) attributes {dimension_semantics = [#tpu.dimension_semantics<parallel>, #tpu.dimension_semantics<arbitrary>], iteration_bounds = array<i64: 1, 1>, scalar_prefetch = 0 : i64, scratch_operands = 0 : i64, tpu.core_type = #tpu.core_type<tc>, window_params = [{transform_indices = @transform_0, window_bounds = array<i64: 16, 256>}, {transform_indices = @transform_1, window_bounds = array<i64: 256, 256>}, {transform_indices = @transform_2, window_bounds = array<i64: 256, 256>}, {pipeline_mode = #tpu.pipeline_mode<synchronous>, transform_indices = @transform_3, window_bounds = array<i64: 1, 256>}, {transform_indices = @transform_4, window_bounds = array<i64: 16, 256>}]} {
    %c0_i32 = arith.constant 0 : i32
    %0 = arith.cmpi eq, %arg1, %c0_i32 : i32
    %1 = arith.extui %0 : i1 to i32
    %c0_i32_0 = arith.constant 0 : i32
    %2 = arith.cmpi ne, %1, %c0_i32_0 : i32
    scf.if %2 {
      %cst_13 = arith.constant 0.000000e+00 : f32
      %15 = vector.broadcast %cst_13 : f32 to vector<16x256xf32>
      %c0_14 = arith.constant 0 : index
      %c0_15 = arith.constant 0 : index
      %16 = vector.load %arg6[%c0_14, %c0_15] : memref<16x256xf32, #tpu.memory_space<vmem>>, vector<16x256xf32>
      tpu.vector_store %arg6[%c0_14, %c0_15], %15 {strides = array<i32>} : memref<16x256xf32, #tpu.memory_space<vmem>>, vector<16x256xf32>,
    } else {
    }
    %c0 = arith.constant 0 : index
    %c0_1 = arith.constant 0 : index
    %3 = vector.load %arg2[%c0, %c0_1] : memref<16x256xbf16, #tpu.memory_space<vmem>>, vector<16x256xbf16>
    %c0_2 = arith.constant 0 : index
    %c0_3 = arith.constant 0 : index
    %4 = vector.load %arg3[%c0_2, %c0_3] : memref<256x256xbf16, #tpu.memory_space<vmem>>, vector<256x256xbf16>
    %cst = arith.constant dense<0.000000e+00> : vector<16x256xf32>
    %5 = tpu.matmul %3, %4, %cst {dimension_numbers = #tpu.dot_dimension_numbers<[1], [0], [0], [1], [0, 0, 1, 1], [], []>} : vector<16x256xbf16>, vector<256x256xbf16>, vector<16x256xf32> -> vector<16x256xf32>
    %c0_4 = arith.constant 0 : index
    %c0_5 = arith.constant 0 : index
    %6 = vector.load %arg6[%c0_4, %c0_5] : memref<16x256xf32, #tpu.memory_space<vmem>>, vector<16x256xf32>
    %7 = arith.truncf %5 : vector<16x256xf32> to vector<16x256xbf16>
    %c0_6 = arith.constant 0 : index
    %c0_7 = arith.constant 0 : index
    %8 = vector.load %arg4[%c0_6, %c0_7] : memref<256x256xbf16, #tpu.memory_space<vmem>>, vector<256x256xbf16>
    %cst_8 = arith.constant dense<0.000000e+00> : vector<16x256xf32>
    %9 = tpu.matmul %7, %8, %cst_8 {dimension_numbers = #tpu.dot_dimension_numbers<[1], [0], [0], [1], [0, 0, 1, 1], [], []>} : vector<16x256xbf16>, vector<256x256xbf16>, vector<16x256xf32> -> vector<16x256xf32>
    %10 = arith.addf %6, %9 : vector<16x256xf32>
    %c0_9 = arith.constant 0 : index
    %c0_10 = arith.constant 0 : index
    %11 = vector.load %arg6[%c0_9, %c0_10] : memref<16x256xf32, #tpu.memory_space<vmem>>, vector<16x256xf32>
    tpu.vector_store %arg6[%c0_9, %c0_10], %10 {strides = array<i32>} : memref<16x256xf32, #tpu.memory_space<vmem>>, vector<16x256xf32>,
    %c0_i32_11 = arith.constant 0 : i32
    %12 = arith.cmpi eq, %arg1, %c0_i32_11 : i32
    %13 = arith.extui %12 : i1 to i32
    %c0_i32_12 = arith.constant 0 : i32
    %14 = arith.cmpi ne, %13, %c0_i32_12 : i32
    scf.if %14 {
      %c0_13 = arith.constant 0 : index
      %c0_14 = arith.constant 0 : index
      %15 = vector.load %arg6[%c0_13, %c0_14] : memref<16x256xf32, #tpu.memory_space<vmem>>, vector<16x256xf32>
      %c0_15 = arith.constant 0 : index
      %c0_16 = arith.constant 0 : index
      %16 = vector.load %arg5[%c0_15, %c0_16] : memref<1x256xf32, #tpu.memory_space<vmem>>, vector<1x256xf32>
      %17 = vector.broadcast %16 : vector<1x256xf32> to vector<16x256xf32>
      %18 = arith.addf %15, %17 : vector<16x256xf32>
      %c0_17 = arith.constant 0 : index
      %c0_18 = arith.constant 0 : index
      %19 = vector.load %arg6[%c0_17, %c0_18] : memref<16x256xf32, #tpu.memory_space<vmem>>, vector<16x256xf32>
      tpu.vector_store %arg6[%c0_17, %c0_18], %18 {strides = array<i32>} : memref<16x256xf32, #tpu.memory_space<vmem>>, vector<16x256xf32>,
    } else {
    }
    return
  }
  func.func @transform_0(%arg0: i32, %arg1: i32) -> (i32, i32) {
    %c0_i32 = arith.constant 0 : i32
    %c0_i32_0 = arith.constant 0 : i32
    return %arg0, %c0_i32 : i32, i32
  }
  func.func @transform_1(%arg0: i32, %arg1: i32) -> (i32, i32) {
    %c0_i32 = arith.constant 0 : i32
    %c0_i32_0 = arith.constant 0 : i32
    return %c0_i32, %arg1 : i32, i32
  }
  func.func @transform_2(%arg0: i32, %arg1: i32) -> (i32, i32) {
    %c0_i32 = arith.constant 0 : i32
    %c0_i32_0 = arith.constant 0 : i32
    return %arg1, %c0_i32 : i32, i32
  }
  func.func @transform_3(%arg0: i32, %arg1: i32) -> (i32, i32) {
    %c0_i32 = arith.constant 0 : i32
    %c0_i32_0 = arith.constant 0 : i32
    %c0_i32_1 = arith.constant 0 : i32
    return %c0_i32, %c0_i32_0 : i32, i32
  }
  func.func @transform_4(%arg0: i32, %arg1: i32) -> (i32, i32) {
    %c0_i32 = arith.constant 0 : i32
    %c0_i32_0 = arith.constant 0 : i32
    return %arg0, %c0_i32 : i32, i32
  }
}

</mosaic_0001>

<bundles_post_ra>
// kernel: tpu_custom_call.1
= control target key start
LH: loop header
LB: loop body
LE: loop exit
PB: predicated region body
PF: predicated region fallthrough
CT: control target
= control target key end

     0   :  { %9 = vsyncpa [#allocation3], 0  ;;  %s1125_s0 = inlined_call_operand.hbm [shape: bf16[16,256], index: 0, kind: input, shape index: {}]   ;;  %s1126_s1 = inlined_call_operand.hbm [shape: bf16[256,256], index: 1, kind: input, shape index: {}]   ;;  %s1127_s2 = inlined_call_operand.hbm [shape: bf16[256,256], index: 2, kind: input, shape index: {}]   ;;  %s1128_s3 = inlined_call_operand.vmem [shape: f32[1,256], index: 3, kind: input, shape index: {}]   ;;  %s1129_s4 = inlined_call_operand.hbm [shape: f32[16,256], index: 4, kind: output, shape index: {}]  }
   0x1   :  { %10 = vsyncpa [#allocation6], 0 }
   0x2   :  { %11 = vsyncpa [#allocation4], 0  ;;  %s29_s17 = sshll.u32 %s1126_s1, 4  ;;  %s1077_s18 = smov [#allocation5]   ;;  %s30_s17 = int_to_ptr.hbm [resolvable:$true] %s29_s17 }
   0x3   :  { %s31_s19 = sshll.u32 %s1077_s18, 4  ;;  %s16_s22 = sshll.u32 %s1125_s0, 4  ;;  %s32_s19 = int_to_ptr.vmem [resolvable:$true] %s31_s19  ;;  %s17_s22 = int_to_ptr.hbm [resolvable:$true] %s16_s22 }
   0x4   :  { %s1078_s23 = smov 128   ;;  %s1079_s24 = smov 8  }
   0x5   :  { %37 = dma.hbm_to_vmem [thread:$0]  %s30_s17, 4096, %s32_s19, [#allocation6], %s1078_s23, %s1078_s23, %s1079_s24  }
   0x6   :  { %s1080_s25 = smov [#allocation2]   ;;  %s42_s29 = sshll.u32 %s1127_s2, 4  ;;  %s43_s29 = int_to_ptr.hbm [resolvable:$true] %s42_s29 }
   0x7   :  { %s18_s26 = sshll.u32 %s1080_s25, 4  ;;  %s1081_s1 = smov [#allocation7]   ;;  %s19_s26 = int_to_ptr.vmem [resolvable:$true] %s18_s26 }
   0x8   :  { %24 = dma.hbm_to_vmem [thread:$0]  %s17_s22, 256, %s19_s26, [#allocation3], %s1078_s23, %s1078_s23, %s1079_s24  }
   0x9   :  { %s44_s30 = sshll.u32 %s1081_s1, 4  ;;  %s45_s30 = int_to_ptr.vmem [resolvable:$true] %s44_s30 }
   0xa   :  { %50 = dma.hbm_to_vmem [thread:$0]  %s43_s29, 4096, %s45_s30, [#allocation6], %s1078_s23, %s1078_s23, %s1079_s24  }
   0xb   :  { %1071 = dma.done.wait [#allocation3], 256  }
   0xc   :  { %1072 = vsyncadd [#allocation3], 4294967040 }
   0xd   :  { %1073 = dma.done.wait [#allocation6], 8192  }
   0xe   :  { %1074 = vsyncadd [#allocation6], 4294959104  ;;  %v702_v0 = vld [vmem:[#allocation5 + $0x70] sm:$0xf]  ;;  %v917_v1 = vld [vmem:[#allocation5 + $0x74] sm:$0xf0] }
   0xf   :  { %v766_v2 = vld [vmem:[#allocation5 + $0xf0] sm:$0xf]  ;;  %v703_v3 = vor.u32 %v917_v1, %v702_v0  ;;  %v933_v4 = vld [vmem:[#allocation5 + $0xf4] sm:$0xf0]  ;;  %v916_v5 = vld [vmem:[#allocation5 + $0x74] sm:$0xf] }
  0x10   :  { %v704_v6 = vld [vmem:[#allocation5 + $0x78] sm:$0xf0]  ;;  %v767_v7 = vor.u32 %v933_v4, %v766_v2  ;;  %v932_v9 = vld [vmem:[#allocation5 + $0xf4] sm:$0xf]  ;;  %v694_v11 = vld [vmem:[#allocation5 + $0x60] sm:$0xf] }
  0x11   :  { %v707_v8 = vor.u32 %v916_v5, %v704_v6  ;;  %v768_v10 = vld [vmem:[#allocation5 + $0xf8] sm:$0xf0]  ;;  %277 = vmatpush.bf16.msra.mxu0 %v703_v3  ;;  %v915_v13 = vld [vmem:[#allocation5 + $0x64] sm:$0xf0]  ;;  %v758_v14 = vld [vmem:[#allocation5 + $0xe0] sm:$0xf] }
  0x12   :  { %v771_v12 = vor.u32 %v932_v9, %v768_v10  ;;  %v931_v15 = vld [vmem:[#allocation5 + $0xe4] sm:$0xf0]  ;;  %291 = vmatpush.bf16.msra.mxu1 %v767_v7  ;;  %v695_v16 = vor.u32 %v915_v13, %v694_v11  ;;  %v914_v18 = vld [vmem:[#allocation5 + $0x64] sm:$0xf]  ;;  %v696_v19 = vld [vmem:[#allocation5 + $0x68] sm:$0xf0] }
  0x13   :  { %305 = vmatpush.bf16.msra.mxu2 %v707_v8  ;;  %v759_v17 = vor.u32 %v931_v15, %v758_v14  ;;  %v930_v20 = vld [vmem:[#allocation5 + $0xe4] sm:$0xf]  ;;  %v699_v21 = vor.u32 %v914_v18, %v696_v19  ;;  %v760_v22 = vld [vmem:[#allocation5 + $0xe8] sm:$0xf0]  ;;  %v686_v23 = vld [vmem:[#allocation5 + $0x50] sm:$0xf] }
  0x14   :  { %319 = vmatpush.bf16.msra.mxu3 %v771_v12  ;;  %v913_v24 = vld [vmem:[#allocation5 + $0x54] sm:$0xf0]  ;;  %v763_v25 = vor.u32 %v930_v20, %v760_v22  ;;  %v750_v26 = vld [vmem:[#allocation5 + $0xd0] sm:$0xf]  ;;  %v912_v28 = vld [vmem:[#allocation5 + $0x54] sm:$0xf] }
  0x15   :  { %v929_v27 = vld [vmem:[#allocation5 + $0xd4] sm:$0xf0]  ;;  %278 = vmatpush.bf16.msra.mxu0 %v695_v16  ;;  %v687_v29 = vor.u32 %v913_v24, %v686_v23  ;;  %v688_v30 = vld [vmem:[#allocation5 + $0x58] sm:$0xf0]  ;;  %v928_v31 = vld [vmem:[#allocation5 + $0xd4] sm:$0xf] }
  0x16   :  { %v752_v32 = vld [vmem:[#allocation5 + $0xd8] sm:$0xf0]  ;;  %292 = vmatpush.bf16.msra.mxu1 %v759_v17  ;;  %v751_v33 = vor.u32 %v929_v27, %v750_v26  ;;  %v691_v34 = vor.u32 %v912_v28, %v688_v30  ;;  %v678_v35 = vld [vmem:[#allocation5 + $0x40] sm:$0xf]  ;;  %v911_v36 = vld [vmem:[#allocation5 + $0x44] sm:$0xf0] }
  0x17   :  { %306 = vmatpush.bf16.msra.mxu2 %v699_v21  ;;  %v742_v37 = vld [vmem:[#allocation5 + $0xc0] sm:$0xf]  ;;  %v755_v38 = vor.u32 %v928_v31, %v752_v32  ;;  %v927_v39 = vld [vmem:[#allocation5 + $0xc4] sm:$0xf0]  ;;  %v910_v40 = vld [vmem:[#allocation5 + $0x44] sm:$0xf]  ;;  %v679_v44 = vor.u32 %v911_v36, %v678_v35 }
  0x18   :  { %320 = vmatpush.bf16.msra.mxu3 %v763_v25  ;;  %v680_v41 = vld [vmem:[#allocation5 + $0x48] sm:$0xf0]  ;;  %v926_v42 = vld [vmem:[#allocation5 + $0xc4] sm:$0xf]  ;;  %v743_v45 = vor.u32 %v927_v39, %v742_v37  ;;  %v670_v47 = vld [vmem:[#allocation5 + $0x30] sm:$0xf] }
  0x19   :  { %v744_v43 = vld [vmem:[#allocation5 + $0xc8] sm:$0xf0]  ;;  %279 = vmatpush.bf16.msra.mxu0 %v687_v29  ;;  %v683_v46 = vor.u32 %v910_v40, %v680_v41  ;;  %v909_v48 = vld [vmem:[#allocation5 + $0x34] sm:$0xf0]  ;;  %v734_v49 = vld [vmem:[#allocation5 + $0xb0] sm:$0xf] }
  0x1a   :  { %293 = vmatpush.bf16.msra.mxu1 %v751_v33  ;;  %v747_v50 = vor.u32 %v926_v42, %v744_v43  ;;  %v925_v51 = vld [vmem:[#allocation5 + $0xb4] sm:$0xf0]  ;;  %v908_v52 = vld [vmem:[#allocation5 + $0x34] sm:$0xf]  ;;  %v672_v53 = vld [vmem:[#allocation5 + $0x38] sm:$0xf0]  ;;  %v671_v56 = vor.u32 %v909_v48, %v670_v47 }
  0x1b   :  { %307 = vmatpush.bf16.msra.mxu2 %v691_v34  ;;  %v924_v54 = vld [vmem:[#allocation5 + $0xb4] sm:$0xf]  ;;  %v736_v55 = vld [vmem:[#allocation5 + $0xb8] sm:$0xf0]  ;;  %v735_v57 = vor.u32 %v925_v51, %v734_v49  ;;  %v675_v58 = vor.u32 %v908_v52, %v672_v53  ;;  %v662_v59 = vld [vmem:[#allocation5 + $0x20] sm:$0xf] }
  0x1c   :  { %321 = vmatpush.bf16.msra.mxu3 %v755_v38  ;;  %v907_v60 = vld [vmem:[#allocation5 + $0x24] sm:$0xf0]  ;;  %v726_v61 = vld [vmem:[#allocation5 + $0xa0] sm:$0xf]  ;;  %v739_v62 = vor.u32 %v924_v54, %v736_v55  ;;  %v906_v0 = vld [vmem:[#allocation5 + $0x24] sm:$0xf] }
  0x1d   :  { %280 = vmatpush.bf16.msra.mxu0 %v679_v44  ;;  %v923_v63 = vld [vmem:[#allocation5 + $0xa4] sm:$0xf0]  ;;  %v664_v1 = vld [vmem:[#allocation5 + $0x28] sm:$0xf0]  ;;  %v922_v2 = vld [vmem:[#allocation5 + $0xa4] sm:$0xf]  ;;  %v663_v4 = vor.u32 %v907_v60, %v662_v59 }
  0x1e   :  { %294 = vmatpush.bf16.msra.mxu1 %v743_v45  ;;  %v728_v3 = vld [vmem:[#allocation5 + $0xa8] sm:$0xf0]  ;;  %v727_v5 = vor.u32 %v923_v63, %v726_v61  ;;  %v667_v6 = vor.u32 %v906_v0, %v664_v1  ;;  %v654_v7 = vld [vmem:[#allocation5 + $0x10] sm:$0xf]  ;;  %v905_v8 = vld [vmem:[#allocation5 + $0x14] sm:$0xf0] }
  0x1f   :  { %308 = vmatpush.bf16.msra.mxu2 %v683_v46  ;;  %v718_v9 = vld [vmem:[#allocation5 + $0x90] sm:$0xf]  ;;  %v731_v10 = vor.u32 %v922_v2, %v728_v3  ;;  %v921_v11 = vld [vmem:[#allocation5 + $0x94] sm:$0xf0]  ;;  %v904_v12 = vld [vmem:[#allocation5 + $0x14] sm:$0xf]  ;;  %v655_v16 = vor.u32 %v905_v8, %v654_v7 }
  0x20   :  { %322 = vmatpush.bf16.msra.mxu3 %v747_v50  ;;  %v656_v13 = vld [vmem:[#allocation5 + $0x18] sm:$0xf0]  ;;  %v920_v14 = vld [vmem:[#allocation5 + $0x94] sm:$0xf]  ;;  %v646_v17 = vld [vmem:[#allocation5] sm:$0xf]  ;;  %v719_v19 = vor.u32 %v921_v11, %v718_v9 }
  0x21   :  { %281 = vmatpush.bf16.msra.mxu0 %v671_v56  ;;  %v720_v15 = vld [vmem:[#allocation5 + $0x98] sm:$0xf0]  ;;  %v903_v18 = vld [vmem:[#allocation5 + $0x4] sm:$0xf0]  ;;  %v659_v20 = vor.u32 %v904_v12, %v656_v13  ;;  %v710_v21 = vld [vmem:[#allocation5 + $0x80] sm:$0xf] }
  0x22   :  { %295 = vmatpush.bf16.msra.mxu1 %v735_v57  ;;  %v919_v22 = vld [vmem:[#allocation5 + $0x84] sm:$0xf0]  ;;  %v902_v23 = vld [vmem:[#allocation5 + $0x4] sm:$0xf]  ;;  %v723_v24 = vor.u32 %v920_v14, %v720_v15  ;;  %v648_v25 = vld [vmem:[#allocation5 + $0x8] sm:$0xf0]  ;;  %v647_v31 = vor.u32 %v903_v18, %v646_v17 }
  0x23   :  { %309 = vmatpush.bf16.msra.mxu2 %v675_v58  ;;  %v918_v26 = vld [vmem:[#allocation5 + $0x84] sm:$0xf]  ;;  %v712_v27 = vld [vmem:[#allocation5 + $0x88] sm:$0xf0]  ;;  %v638_v28 = vld [vmem:[#allocation2] sm:$0xf]  ;;  %v711_v35 = vor.u32 %v919_v22, %v710_v21  ;;  %v651_v36 = vor.u32 %v902_v23, %v648_v25 }
  0x24   :  { %323 = vmatpush.bf16.msra.mxu3 %v739_v62  ;;  %v830_v29 = vld [vmem:[#allocation7 + $0x70] sm:$0xf]  ;;  %v949_v30 = vld [vmem:[#allocation7 + $0x74] sm:$0xf0]  ;;  %v948_v33 = vld [vmem:[#allocation7 + $0x74] sm:$0xf]  ;;  %v715_v39 = vor.u32 %v918_v26, %v712_v27 }
  0x25   :  { %282 = vmatpush.bf16.msra.mxu0 %v663_v4  ;;  %v901_v32 = vld [vmem:[#allocation2 + $0x4] sm:$0xf0]  ;;  %v832_v34 = vld [vmem:[#allocation7 + $0x78] sm:$0xf0]  ;;  %v900_v37 = vld [vmem:[#allocation2 + $0x4] sm:$0xf]  ;;  %v831_v40 = vor.u32 %v949_v30, %v830_v29 }
  0x26   :  { %296 = vmatpush.bf16.msra.mxu1 %v727_v5  ;;  %v640_v38 = vld [vmem:[#allocation2 + $0x8] sm:$0xf0]  ;;  %v822_v41 = vld [vmem:[#allocation7 + $0x60] sm:$0xf]  ;;  %v894_v42 = vld [vmem:[#allocation7 + $0xf0] sm:$0xf]  ;;  %v639_v44 = vor.u32 %v901_v32, %v638_v28  ;;  %v835_v45 = vor.u32 %v948_v33, %v832_v34 }
  0x27   :  { %310 = vmatpush.bf16.msra.mxu2 %v667_v6  ;;  %v965_v43 = vld [vmem:[#allocation7 + $0xf4] sm:$0xf0]  ;;  %v947_v46 = vld [vmem:[#allocation7 + $0x64] sm:$0xf0]  ;;  %v964_v47 = vld [vmem:[#allocation7 + $0xf4] sm:$0xf]  ;;  %v643_v49 = vor.u32 %v900_v37, %v640_v38 }
  0x28   :  { %324 = vmatpush.bf16.msra.mxu3 %v731_v10  ;;  %v896_v48 = vld [vmem:[#allocation7 + $0xf8] sm:$0xf0]  ;;  %v946_v50 = vld [vmem:[#allocation7 + $0x64] sm:$0xf]  ;;  %v824_v51 = vld [vmem:[#allocation7 + $0x68] sm:$0xf0]  ;;  %v895_v52 = vor.u32 %v965_v43, %v894_v42  ;;  %v823_v53 = vor.u32 %v947_v46, %v822_v41 }
  0x29   :  { %283 = vmatpush.bf16.msra.mxu0 %v655_v16  ;;  %v899_v54 = vor.u32 %v964_v47, %v896_v48  ;;  %v814_v55 = vld [vmem:[#allocation7 + $0x50] sm:$0xf]  ;;  %v886_v56 = vld [vmem:[#allocation7 + $0xe0] sm:$0xf]  ;;  %v963_v57 = vld [vmem:[#allocation7 + $0xe4] sm:$0xf0]  ;;  %v827_v58 = vor.u32 %v946_v50, %v824_v51 }
  0x2a   :  { %297 = vmatpush.bf16.msra.mxu1 %v719_v19  ;;  %v945_v59 = vld [vmem:[#allocation7 + $0x54] sm:$0xf0]  ;;  %v962_v60 = vld [vmem:[#allocation7 + $0xe4] sm:$0xf]  ;;  %v888_v61 = vld [vmem:[#allocation7 + $0xe8] sm:$0xf0]  ;;  %v887_v0 = vor.u32 %v963_v57, %v886_v56 }
  0x2b   :  { %311 = vmatpush.bf16.msra.mxu2 %v659_v20  ;;  %v944_v62 = vld [vmem:[#allocation7 + $0x54] sm:$0xf]  ;;  %v816_v63 = vld [vmem:[#allocation7 + $0x58] sm:$0xf0]  ;;  %v815_v1 = vor.u32 %v945_v59, %v814_v55  ;;  %v891_v2 = vor.u32 %v962_v60, %v888_v61  ;;  %v806_v3 = vld [vmem:[#allocation7 + $0x40] sm:$0xf] }
  0x2c   :  { %325 = vmatpush.bf16.msra.mxu3 %v723_v24  ;;  %v878_v4 = vld [vmem:[#allocation7 + $0xd0] sm:$0xf]  ;;  %v961_v5 = vld [vmem:[#allocation7 + $0xd4] sm:$0xf0]  ;;  %v819_v6 = vor.u32 %v944_v62, %v816_v63  ;;  %v943_v7 = vld [vmem:[#allocation7 + $0x44] sm:$0xf0] }
  0x2d   :  { %284 = vmatpush.bf16.msra.mxu0 %v647_v31  ;;  %v960_v8 = vld [vmem:[#allocation7 + $0xd4] sm:$0xf]  ;;  %v880_v9 = vld [vmem:[#allocation7 + $0xd8] sm:$0xf0]  ;;  %v942_v10 = vld [vmem:[#allocation7 + $0x44] sm:$0xf]  ;;  %v879_v12 = vor.u32 %v961_v5, %v878_v4  ;;  %v807_v13 = vor.u32 %v943_v7, %v806_v3 }
  0x2e   :  { %298 = vmatpush.bf16.msra.mxu1 %v711_v35  ;;  %v808_v11 = vld [vmem:[#allocation7 + $0x48] sm:$0xf0]  ;;  %v883_v14 = vor.u32 %v960_v8, %v880_v9  ;;  %v798_v16 = vld [vmem:[#allocation7 + $0x30] sm:$0xf]  ;;  %v941_v17 = vld [vmem:[#allocation7 + $0x34] sm:$0xf0] }
  0x2f   :  { %312 = vmatpush.bf16.msra.mxu2 %v651_v36  ;;  %v811_v15 = vor.u32 %v942_v10, %v808_v11  ;;  %v940_v18 = vld [vmem:[#allocation7 + $0x34] sm:$0xf]  ;;  %v800_v19 = vld [vmem:[#allocation7 + $0x38] sm:$0xf0]  ;;  %v799_v20 = vor.u32 %v941_v17, %v798_v16  ;;  %v870_v22 = vld [vmem:[#allocation7 + $0xc0] sm:$0xf] }
  0x30   :  { %326 = vmatpush.bf16.msra.mxu3 %v715_v39  ;;  %285 = vmatmul.bf16.vlgmr.msra.gmra.mxu0 %v639_v44  ;;  %v803_v21 = vor.u32 %v940_v18, %v800_v19  ;;  %v959_v23 = vld [vmem:[#allocation7 + $0xc4] sm:$0xf0]  ;;  %v958_v24 = vld [vmem:[#allocation7 + $0xc4] sm:$0xf]  ;;  %v872_v26 = vld [vmem:[#allocation7 + $0xc8] sm:$0xf0] }
  0x31   :  { %531 = vmatpush.bf16.msrb.mxu0 %v831_v40  ;;  %299 = vmatmul.bf16.vlgmr.msra.gmra.mxu1 %v643_v49  ;;  %v871_v25 = vor.u32 %v959_v23, %v870_v22  ;;  %v875_v27 = vor.u32 %v958_v24, %v872_v26  ;;  %v790_v28 = vld [vmem:[#allocation7 + $0x20] sm:$0xf]  ;;  %v939_v29 = vld [vmem:[#allocation7 + $0x24] sm:$0xf0]  ;;  %v938_v30 = vld [vmem:[#allocation7 + $0x24] sm:$0xf] }
  0x32   :  { %313 = vmatmul.bf16.vlgmr.msra.gmra.mxu2 %v639_v44  ;;  %545 = vmatpush.bf16.msrb.mxu1 %v895_v52  ;;  %v791_v31 = vor.u32 %v939_v29, %v790_v28  ;;  %v792_v32 = vld [vmem:[#allocation7 + $0x28] sm:$0xf0]  ;;  %v862_v33 = vld [vmem:[#allocation7 + $0xb0] sm:$0xf]  ;;  %v957_v34 = vld [vmem:[#allocation7 + $0xb4] sm:$0xf0] }
  0x33   :  { %559 = vmatpush.bf16.msrb.mxu2 %v835_v45  ;;  %327 = vmatmul.bf16.vlgmr.msra.gmra.mxu3 %v643_v49  ;;  %v795_v35 = vor.u32 %v938_v30, %v792_v32  ;;  %v863_v36 = vor.u32 %v957_v34, %v862_v33  ;;  %v956_v37 = vld [vmem:[#allocation7 + $0xb4] sm:$0xf]  ;;  %v864_v38 = vld [vmem:[#allocation7 + $0xb8] sm:$0xf0]  ;;  %v782_v40 = vld [vmem:[#allocation7 + $0x10] sm:$0xf] }
  0x34   :  { %573 = vmatpush.bf16.msrb.mxu3 %v899_v54  ;;  %v867_v39 = vor.u32 %v956_v37, %v864_v38  ;;  %v937_v41 = vld [vmem:[#allocation7 + $0x14] sm:$0xf0]  ;;  %v936_v42 = vld [vmem:[#allocation7 + $0x14] sm:$0xf]  ;;  %v784_v44 = vld [vmem:[#allocation7 + $0x18] sm:$0xf0] }
  0x35   :  { %532 = vmatpush.bf16.msrb.mxu0 %v823_v53  ;;  %v783_v43 = vor.u32 %v937_v41, %v782_v40  ;;  %v787_v45 = vor.u32 %v936_v42, %v784_v44  ;;  %v854_v46 = vld [vmem:[#allocation7 + $0xa0] sm:$0xf]  ;;  %v955_v47 = vld [vmem:[#allocation7 + $0xa4] sm:$0xf0]  ;;  %v954_v48 = vld [vmem:[#allocation7 + $0xa4] sm:$0xf] }
  0x36   :  { %546 = vmatpush.bf16.msrb.mxu1 %v887_v0  ;;  %v855_v49 = vor.u32 %v955_v47, %v854_v46  ;;  %v856_v50 = vld [vmem:[#allocation7 + $0xa8] sm:$0xf0]  ;;  %v774_v52 = vld [vmem:[#allocation7] sm:$0xf]  ;;  %v935_v53 = vld [vmem:[#allocation7 + $0x4] sm:$0xf0] }
  0x37   :  { %560 = vmatpush.bf16.msrb.mxu2 %v827_v58  ;;  %v859_v51 = vor.u32 %v954_v48, %v856_v50  ;;  %v934_v54 = vld [vmem:[#allocation7 + $0x4] sm:$0xf]  ;;  %v775_v55 = vor.u32 %v935_v53, %v774_v52  ;;  %v776_v56 = vld [vmem:[#allocation7 + $0x8] sm:$0xf0]  ;;  %v846_v58 = vld [vmem:[#allocation7 + $0x90] sm:$0xf] }
  0x38   :  { %574 = vmatpush.bf16.msrb.mxu3 %v891_v2  ;;  %v779_v57 = vor.u32 %v934_v54, %v776_v56  ;;  %v953_v59 = vld [vmem:[#allocation7 + $0x94] sm:$0xf0]  ;;  %v952_v60 = vld [vmem:[#allocation7 + $0x94] sm:$0xf]  ;;  %v848_v62 = vld [vmem:[#allocation7 + $0x98] sm:$0xf0] }
  0x39   :  { %533 = vmatpush.bf16.msrb.mxu0 %v815_v1  ;;  %v847_v61 = vor.u32 %v953_v59, %v846_v58  ;;  %v851_v63 = vor.u32 %v952_v60, %v848_v62  ;;  %v838_v0 = vld [vmem:[#allocation7 + $0x80] sm:$0xf]  ;;  %v951_v1 = vld [vmem:[#allocation7 + $0x84] sm:$0xf0]  ;;  %v950_v2 = vld [vmem:[#allocation7 + $0x84] sm:$0xf] }
  0x3a   :  { %547 = vmatpush.bf16.msrb.mxu1 %v879_v12  ;;  %v839_v3 = vor.u32 %v951_v1, %v838_v0  ;;  %v840_v4 = vld [vmem:[#allocation7 + $0x88] sm:$0xf0]  ;;  %s622_s8 = sshll.u32 %s1129_s4, 4  ;;  %s1083_s9 = smov 256   ;;  %s623_s8 = int_to_ptr.hbm [resolvable:$true] %s622_s8 }
  0x3b   :  { %561 = vmatpush.bf16.msrb.mxu2 %v819_v6  ;;  %v843_v5 = vor.u32 %v950_v2, %v840_v4  ;;  %s1084_s10 = smov 16  }
  0x3c   :  { %575 = vmatpush.bf16.msrb.mxu3 %v883_v14 }
  0x3d   :  { %534 = vmatpush.bf16.msrb.mxu0 %v807_v13 }
  0x3e   :  { %548 = vmatpush.bf16.msrb.mxu1 %v871_v25 }
  0x3f   :  { %562 = vmatpush.bf16.msrb.mxu2 %v811_v15 }
  0x40   :  { %576 = vmatpush.bf16.msrb.mxu3 %v875_v27 }
  0x41   :  { %535 = vmatpush.bf16.msrb.mxu0 %v799_v20 }
  0x42   :  { %549 = vmatpush.bf16.msrb.mxu1 %v863_v36 }
  0x43   :  { %563 = vmatpush.bf16.msrb.mxu2 %v803_v21  ;;  %v602_v21 = vld [vmem:[%s1128_s3] sm:$0x3]  ;;  %s1082_s3 = smov [#allocation8]  }
  0x44   :  { %577 = vmatpush.bf16.msrb.mxu3 %v867_v39  ;;  %v604_v24 = vperm.slane %v602_v21, 0  ;;  %v605_v29 = vperm.slane %v602_v21, 1  ;;  %s620_s5 = sshll.u32 %s1082_s3, 4  ;;  %s621_s5 = int_to_ptr.vmem [resolvable:$true] %s620_s5 }
  0x45   :  { %536 = vmatpush.bf16.msrb.mxu0 %v791_v31 }
  0x46   :  { %550 = vmatpush.bf16.msrb.mxu1 %v855_v49 }
  0x47   :  { %564 = vmatpush.bf16.msrb.mxu2 %v795_v35 }
  0x48   :  { %578 = vmatpush.bf16.msrb.mxu3 %v859_v51 }
  0x49   :  { %537 = vmatpush.bf16.msrb.mxu0 %v783_v43 }
  0x4a   :  { %551 = vmatpush.bf16.msrb.mxu1 %v847_v61 }
  0x4b   :  { %565 = vmatpush.bf16.msrb.mxu2 %v787_v45 }
  0x4c   :  { %579 = vmatpush.bf16.msrb.mxu3 %v851_v63 }
  0x4d   :  { %538 = vmatpush.bf16.msrb.mxu0 %v775_v55 }
  0x4e   :  { %552 = vmatpush.bf16.msrb.mxu1 %v839_v3 }
  0x4f   :  { %566 = vmatpush.bf16.msrb.mxu2 %v779_v57 }
  0x50   :  { %580 = vmatpush.bf16.msrb.mxu3 %v843_v5 }
  0xad   :  { %v286_v6 = vpop.f32.mrf.mxu0 }
  0xae   :  { %v300_v7 = vpop.f32.mrf.mxu1 }
  0xaf   :  { %v301_v12 = vadd.f32 %v300_v7, %v286_v6 }
  0xb5   :  { %v314_v8 = vpop.f32.mrf.mxu2  ;;  %v288_v10 = vpop.f32.mrf.mxu0 }
  0xb6   :  { %v328_v9 = vpop.f32.mrf.mxu3  ;;  %v302_v11 = vpop.f32.mrf.mxu1 }
  0xb7   :  { %v303_v13 = vadd.f32 %v302_v11, %v288_v10  ;;  %v329_v17 = vadd.f32 %v328_v9, %v314_v8 }
  0xb9   :  { %v337_v14 = vpack.c.bf16 %v303_v13, %v301_v12 }
  0xbb   :  { %539 = vmatmul.bf16.vlgmr.msrb.gmra.mxu0 %v337_v14  ;;  %567 = vmatmul.bf16.vlgmr.msrb.gmra.mxu2 %v337_v14 }
  0xbd   :  { %v316_v15 = vpop.f32.mrf.mxu2 }
  0xbe   :  { %v330_v16 = vpop.f32.mrf.mxu3 }
  0xbf   :  { %v331_v18 = vadd.f32 %v330_v16, %v316_v15 }
  0xc1   :  { %v338_v19 = vpack.c.bf16 %v331_v18, %v329_v17 }
  0xc3   :  { %553 = vmatmul.bf16.vlgmr.msrb.gmra.mxu1 %v338_v19  ;;  %581 = vmatmul.bf16.vlgmr.msrb.gmra.mxu3 %v338_v19 }
 0x138   :  { %v540_v20 = vpop.f32.mrf.mxu0 }
 0x13e   :  { %v568_v25 = vpop.f32.mrf.mxu2 }
 0x140   :  { %v554_v22 = vpop.f32.mrf.mxu1  ;;  %v542_v30 = vpop.f32.mrf.mxu0 }
 0x141   :  { %v555_v23 = vadd.f32 %v554_v22, %v540_v20 }
 0x143   :  { %v608_v26 = vadd.f32 %v604_v24, %v555_v23 }
 0x145   :  { %612 = vst [vmem:[#allocation8] sm:$0xff] %v608_v26 }
 0x146   :  { %v582_v27 = vpop.f32.mrf.mxu3  ;;  %v570_v35 = vpop.f32.mrf.mxu2 }
 0x147   :  { %v583_v28 = vadd.f32 %v582_v27, %v568_v25 }
 0x148   :  { %v556_v31 = vpop.f32.mrf.mxu1 }
 0x149   :  { %v557_v32 = vadd.f32 %v556_v31, %v542_v30  ;;  %v609_v33 = vadd.f32 %v605_v29, %v583_v28 }
 0x14b   :  { %613 = vst [vmem:[#allocation8 + $0x8] sm:$0xff] %v609_v33  ;;  %v610_v34 = vadd.f32 %v604_v24, %v557_v32 }
 0x14d   :  { %614 = vst [vmem:[#allocation8 + $0x10] sm:$0xff] %v610_v34 }
 0x14e   :  { %v584_v36 = vpop.f32.mrf.mxu3 }
 0x14f   :  { %v585_v37 = vadd.f32 %v584_v36, %v570_v35 }
 0x151   :  { %v611_v38 = vadd.f32 %v605_v29, %v585_v37 }
 0x153   :  { %615 = vst [vmem:[#allocation8 + $0x18] sm:$0xff] %v611_v38 }
 0x154   :  { %628 = dma.vmem_to_hbm [thread:$0]  %s621_s5, 512, %s623_s8, [#allocation4], %s1083_s9, %s1083_s9, %s1084_s10  }
 0x155   :  { %1075 = dma.done.wait [#allocation4], 512  }
 0x156   :  { %1076 = vsyncadd [#allocation4], 4294966784 }
 0x157   :  { %633 = vsyncpa [#allocation3], 1 }
 0x158   :  { %634 = vsyncpa [#allocation6], 1 }
 0x159   :  { %635 = vsyncpa [#allocation4], 1 }

</bundles_post_ra>
